<compile_context>
chip_gen: v7x
topology: tpu7x:2x2x1
jax: 0.10.0
libtpu: 0.0.40
codegen_flags: <defaults>
</compile_context>

<pallas_src>
import functools

import jax
import jax.numpy as jnp
from jax import lax
from jax.experimental import pallas as pl
from jax.experimental.pallas import tpu as pltpu

TEMPERATURE = 0.05


def _round_up(x, m):
    return ((x + m - 1) // m) * m


def _imix_kernel(lam_ref, f1_ref, f2_ref, f2pos_ref, f2rand_ref, out_ref,
                 sum_e_ref, sum_e2_ref, *, n_valid, mask_cols):
    qi = pl.program_id(0)          # row block of f1 (parallel)
    ki = pl.program_id(1)          # column block (rows of f2) -- reduction axis
    nk = pl.num_programs(1)

    @pl.when(ki == 0)
    def _init():
        sum_e_ref[...] = jnp.zeros_like(sum_e_ref)
        sum_e2_ref[...] = jnp.zeros_like(sum_e2_ref)

    # f1 was pre-scaled by 1/T in the wrapper, so s is already the logit.
    # NT contraction on the MXU with f32 accumulation.
    s = lax.dot_general(
        f1_ref[...], f2_ref[...],
        dimension_numbers=(((1,), (1,)), ((), ())),
        preferred_element_type=jnp.float32)
    e = jnp.exp(s)                 # single exp per element (EUP)
    tq, tk = s.shape

    is_diag = qi == ki             # valid because tq == tk (asserted in wrapper)
    if mask_cols:                  # static: only if B was padded along columns
        need_mask = jnp.logical_or(is_diag, ki == nk - 1)
    else:
        need_mask = is_diag

    @pl.when(need_mask)
    def _masked():
        # Only blocks touching the diagonal / padded columns pay for the mask.
        col = ki * tk + lax.broadcasted_iota(jnp.int32, (1, tk), 1)
        row = qi * tq + lax.broadcasted_iota(jnp.int32, (tq, 1), 0)
        keep = col != row                       # drop the positive pair (i, i)
        if mask_cols:
            keep = jnp.logical_and(keep, col < n_valid)   # drop padded columns
        e_m = jnp.where(keep, e, 0.0)
        sum_e_ref[...] += jnp.sum(e_m, axis=-1, keepdims=True)
        sum_e2_ref[...] += jnp.sum(e_m * e_m, axis=-1, keepdims=True)

    @pl.when(jnp.logical_not(need_mask))
    def _plain():
        # Fast path: no iota, no compare, no select.
        sum_e_ref[...] += jnp.sum(e, axis=-1, keepdims=True)
        sum_e2_ref[...] += jnp.sum(e * e, axis=-1, keepdims=True)

    @pl.when(ki == nk - 1)
    def _finalize():
        lam = lam_ref[0, 0]
        num_neg = float(n_valid - 1)
        # pos / pos_rand: per-row elementwise dots, once per row block.
        # f1 is already scaled by 1/T, so these are the logits directly.
        f1b = f1_ref[...].astype(jnp.float32)
        pos_logit = jnp.sum(f1b * f2pos_ref[...].astype(jnp.float32),
                            axis=-1, keepdims=True)
        rand_logit = jnp.sum(f1b * f2rand_ref[...].astype(jnp.float32),
                             axis=-1, keepdims=True)
        pos = jnp.exp(pos_logit)
        # Ng = sum(neg^2) / (sum(neg) / (B - 1))   (negimp == neg: log().exp())
        ng = sum_e2_ref[...] / (sum_e_ref[...] / num_neg)
        log_denom = jnp.log(ng + pos)
        out = pos_logit - log_denom                  # log(pos / (Ng + pos))
        out_rand = rand_logit - log_denom            # log(pos_rand / (Ng + pos))
        out_ref[...] = -(lam * out + (1.0 - lam) * out_rand)


def imix_conloss(features_1, features_2, mix_rand_list, mix_lambda,
                 *, temperature=TEMPERATURE, block=256):
    """Forward pass of iMIXConLoss. Returns {'instdisc_loss': scalar}."""
    B, D = features_1.shape
    dtype = features_1.dtype            # bf16 inputs feed the MXU directly
    itemsize = jnp.dtype(dtype).itemsize

    # dtype-aware minimum sublane tile: 8 (f32) / 16 (bf16) / 32 (int8/fp8)
    sub = max(8, 32 // itemsize)
    # 256-wide K tiles for the v6e/v7x MXU when D is large; 128 otherwise.
    Dp = _round_up(D, 256) if D > 128 else _round_up(D, 128)

    tile = min(_round_up(block, sub), _round_up(B, sub))
    # Guarantee >= 2 row blocks where possible so v7x's two TensorCores both
    # get work ("parallel" qi axis); harmless on single-TC v5e/v6e.
    if _round_up(B, tile) // tile < 2 and B > sub:
        tile = _round_up(-(-B // 2), sub)
    tq = tk = tile
    assert tq == tk, "diagonal fast path requires square blocks"
    Bq = _round_up(B, tq)               # rows and columns share padding (tq==tk)

    inv_t = 1.0 / float(temperature)
    rand_idx = jnp.asarray(mix_rand_list, jnp.int32)

    # Zero padding: padded feature rows give zero dot products; padded columns
    # are masked inside the kernel (last column block only); padded output
    # rows are sliced away.  f1 is pre-scaled by 1/T (f32) before any cast.
    f1_scaled = (features_1.astype(jnp.float32) * inv_t).astype(dtype)
    f1 = jnp.zeros((Bq, Dp), dtype).at[:B, :D].set(f1_scaled)
    f2 = jnp.zeros((Bq, Dp), dtype).at[:B, :D].set(features_2.astype(dtype))
    f2r = jnp.zeros((Bq, Dp), dtype).at[:B, :D].set(
        features_2[rand_idx].astype(dtype))          # one-time O(B*D) gather
    lam = jnp.asarray(mix_lambda, jnp.float32).reshape(1, 1)

    # VMEM budget: 4 feature inputs double-buffered + f32 (tq,tk) temporaries.
    # Cap so it also fits v7x's 64 MiB physical VMEM.
    feat_tile_bytes = tq * Dp * itemsize
    est = 2 * 4 * feat_tile_bytes + 8 * tq * tk * 4 + 32 * tq * 4
    vmem_limit = max(32 * 1024 * 1024, min(int(est * 1.5), 60 * 1024 * 1024))

    kernel = functools.partial(
        _imix_kernel, n_valid=B, mask_cols=(Bq != B))

    per_row = pl.pallas_call(
        kernel,
        out_shape=jax.ShapeDtypeStruct((Bq, 1), jnp.float32),
        grid_spec=pltpu.PrefetchScalarGridSpec(
            num_scalar_prefetch=0,
            grid=(Bq // tq, Bq // tk),
            in_specs=[
                pl.BlockSpec((1, 1), lambda qi, ki: (0, 0),
                             memory_space=pltpu.MemorySpace.SMEM),   # lambda
                pl.BlockSpec((tq, Dp), lambda qi, ki: (qi, 0)),      # f1 rows
                pl.BlockSpec((tk, Dp), lambda qi, ki: (ki, 0)),      # f2 (negatives)
                pl.BlockSpec((tq, Dp), lambda qi, ki: (qi, 0)),      # f2 (pos partner)
                pl.BlockSpec((tq, Dp), lambda qi, ki: (qi, 0)),      # f2[rand] partner
            ],
            out_specs=pl.BlockSpec((tq, 1), lambda qi, ki: (qi, 0)),
            scratch_shapes=[
                pltpu.VMEM((tq, 1), jnp.float32),   # rowsum(exp(s))   off-diag
                pltpu.VMEM((tq, 1), jnp.float32),   # rowsum(exp(s)^2) off-diag
            ],
        ),
        compiler_params=pltpu.CompilerParams(
            dimension_semantics=("parallel", "arbitrary"),
            vmem_limit_bytes=vmem_limit,
        ),
    )(lam, f1, f2, f2, f2r)

    loss = jnp.mean(per_row[:B, 0])
    return {"instdisc_loss": loss}


def _reference(features_1, features_2, mix_rand_list, mix_lambda, t=TEMPERATURE):
    # Pure-JAX transcription of the PyTorch forward, for sanity checking.
    B = features_1.shape[0]
    all_sim = (features_1 @ features_2.T) / t
    pos = jnp.exp(jnp.sum(features_1 * features_2, -1) / t)
    pos_rand = jnp.exp(jnp.sum(features_1 * features_2[mix_rand_list], -1) / t)
    mask = ~jnp.eye(B, dtype=bool)
    neg = jnp.exp(all_sim)
    negimp = neg  # .log().exp() is the identity
    ng = jnp.sum(negimp * neg * mask, -1) / (jnp.sum(negimp * mask, -1) / (B - 1))
    out = jnp.log(pos / (ng + pos))
    out_rand = jnp.log(pos_rand / (ng + pos))
    return -jnp.mean(mix_lambda * out + (1.0 - mix_lambda) * out_rand)


if __name__ == "__main__":
    key = jax.random.PRNGKey(0)
    k1, k2, k3 = jax.random.split(key, 3)

    # Small, deliberately non-tile-aligned shapes to exercise padding, the
    # padded-last-column mask, the diagonal fast path and multi-block
    # online accumulation.
    B, D = 100, 48
    f1 = jax.random.normal(k1, (B, D), jnp.float32)
    f2 = jax.random.normal(k2, (B, D), jnp.float32)
    # L2-normalize like typical contrastive features (the reference math
    # overflows f32 for unnormalized inputs with T=0.05, same as PyTorch).
    f1 = f1 / jnp.linalg.norm(f1, axis=-1, keepdims=True)
    f2 = f2 / jnp.linalg.norm(f2, axis=-1, keepdims=True)
    mix_rand_list = jax.random.permutation(k3, B)
    mix_lambda = 0.7

    ref = _reference(f1, f2, mix_rand_list, mix_lambda)

    # Small tiles: multi-block reduction + diagonal/padded-column masked paths.
    loss_a = jax.block_until_ready(
        imix_conloss(f1, f2, mix_rand_list, mix_lambda, block=32)["instdisc_loss"])
    # Default tiles: exercises the >=2-row-block (megacore) tile adjustment.
    loss_b = jax.block_until_ready(
        imix_conloss(f1, f2, mix_rand_list, mix_lambda)["instdisc_loss"])

    assert bool(jnp.isfinite(loss_a)), loss_a
    assert bool(jnp.isfinite(loss_b)), loss_b
    assert jnp.allclose(loss_a, ref, rtol=1e-4, atol=1e-4), (loss_a, ref)
    assert jnp.allclose(loss_b, ref, rtol=1e-4, atol=1e-4), (loss_b, ref)
    print("KERNEL_OK")
</pallas_src>

<mosaic_0001>
module attributes {stable_mosaic.version = 11 : i64} {
  func.func @_imix_kernel(%arg0: i32, %arg1: i32, %arg2: memref<1x1xf32, #tpu.memory_space<smem>>, %arg3: memref<32x128xf32, #tpu.memory_space<vmem>>, %arg4: memref<32x128xf32, #tpu.memory_space<vmem>>, %arg5: memref<32x128xf32, #tpu.memory_space<vmem>>, %arg6: memref<32x128xf32, #tpu.memory_space<vmem>>, %arg7: memref<32x1xf32, #tpu.memory_space<vmem>>, %arg8: memref<32x1xf32, #tpu.memory_space<vmem>>, %arg9: memref<32x1xf32, #tpu.memory_space<vmem>>) attributes {dimension_semantics = [#tpu.dimension_semantics<parallel>, #tpu.dimension_semantics<arbitrary>], iteration_bounds = array<i64: 4, 4>, scalar_prefetch = 0 : i64, scratch_operands = 2 : i64, tpu.core_type = #tpu.core_type<tc>, window_params = [{transform_indices = @transform_0, window_bounds = array<i64: 1, 1>}, {transform_indices = @transform_1, window_bounds = array<i64: 32, 128>}, {transform_indices = @transform_2, window_bounds = array<i64: 32, 128>}, {transform_indices = @transform_3, window_bounds = array<i64: 32, 128>}, {transform_indices = @transform_4, window_bounds = array<i64: 32, 128>}, {transform_indices = @transform_5, window_bounds = array<i64: 32, 1>}]} {
    %c0_i32 = arith.constant 0 : i32
    %0 = arith.cmpi eq, %arg1, %c0_i32 : i32
    %1 = arith.extui %0 : i1 to i32
    %c0_i32_0 = arith.constant 0 : i32
    %2 = arith.cmpi ne, %1, %c0_i32_0 : i32
    scf.if %2 {
      %cst_8 = arith.constant 0.000000e+00 : f32
      %18 = vector.broadcast %cst_8 : f32 to vector<32x1xf32>
      %c0_9 = arith.constant 0 : index
      %c0_10 = arith.constant 0 : index
      %19 = vector.load %arg8[%c0_9, %c0_10] : memref<32x1xf32, #tpu.memory_space<vmem>>, vector<32x1xf32>
      tpu.vector_store %arg8[%c0_9, %c0_10], %18 {strides = array<i32>} : memref<32x1xf32, #tpu.memory_space<vmem>>, vector<32x1xf32>,
      %cst_11 = arith.constant 0.000000e+00 : f32
      %20 = vector.broadcast %cst_11 : f32 to vector<32x1xf32>
      %c0_12 = arith.constant 0 : index
      %c0_13 = arith.constant 0 : index
      %21 = vector.load %arg9[%c0_12, %c0_13] : memref<32x1xf32, #tpu.memory_space<vmem>>, vector<32x1xf32>
      tpu.vector_store %arg9[%c0_12, %c0_13], %20 {strides = array<i32>} : memref<32x1xf32, #tpu.memory_space<vmem>>, vector<32x1xf32>,
    } else {
    }
    %c0 = arith.constant 0 : index
    %c0_1 = arith.constant 0 : index
    %3 = vector.load %arg3[%c0, %c0_1] : memref<32x128xf32, #tpu.memory_space<vmem>>, vector<32x128xf32>
    %c0_2 = arith.constant 0 : index
    %c0_3 = arith.constant 0 : index
    %4 = vector.load %arg4[%c0_2, %c0_3] : memref<32x128xf32, #tpu.memory_space<vmem>>, vector<32x128xf32>
    %cst = arith.constant dense<0.000000e+00> : vector<32x32xf32>
    %5 = tpu.matmul %3, %4, %cst {dimension_numbers = #tpu.dot_dimension_numbers<[1], [1], [0], [0], [0, 0, 1, 0], [], []>} : vector<32x128xf32>, vector<32x128xf32>, vector<32x32xf32> -> vector<32x32xf32>
    %6 = math.exp %5 : vector<32x32xf32>
    %7 = arith.cmpi eq, %arg0, %arg1 : i32
    %c3_i32 = arith.constant 3 : i32
    %8 = arith.cmpi eq, %arg1, %c3_i32 : i32
    %9 = arith.ori %7, %8 : i1
    %10 = arith.extui %9 : i1 to i32
    %c0_i32_4 = arith.constant 0 : i32
    %11 = arith.cmpi ne, %10, %c0_i32_4 : i32
    scf.if %11 {
      %c32_i32 = arith.constant 32 : i32
      %18 = arith.muli %arg1, %c32_i32 : i32
      %19 = tpu.iota {dimensions = array<i32: 1>} : vector<1x32xi32>
      %20 = vector.broadcast %18 : i32 to vector<1x32xi32>
      %21 = arith.addi %20, %19 : vector<1x32xi32>
      %c32_i32_8 = arith.constant 32 : i32
      %22 = arith.muli %arg0, %c32_i32_8 : i32
      %23 = tpu.iota {dimensions = array<i32: 0>} : vector<32x1xi32>
      %24 = vector.broadcast %22 : i32 to vector<32x1xi32>
      %25 = arith.addi %24, %23 : vector<32x1xi32>
      %26 = vector.broadcast %21 : vector<1x32xi32> to vector<32x32xi32>
      %27 = vector.broadcast %25 : vector<32x1xi32> to vector<32x32xi32>
      %28 = arith.cmpi ne, %26, %27 : vector<32x32xi32>
      %c100_i32 = arith.constant 100 : i32
      %29 = vector.broadcast %c100_i32 : i32 to vector<1x32xi32>
      %30 = arith.cmpi slt, %21, %29 : vector<1x32xi32>
      %31 = vector.broadcast %30 : vector<1x32xi1> to vector<32x32xi1>
      %32 = arith.andi %28, %31 : vector<32x32xi1>
      %cst_9 = arith.constant 0.000000e+00 : f32
      %33 = vector.broadcast %cst_9 : f32 to vector<32x32xf32>
      %34 = arith.select %32, %6, %33 : vector<32x32xi1>, vector<32x32xf32>
      %c0_10 = arith.constant 0 : index
      %c0_11 = arith.constant 0 : index
      %35 = vector.load %arg8[%c0_10, %c0_11] : memref<32x1xf32, #tpu.memory_space<vmem>>, vector<32x1xf32>
      %cst_12 = arith.constant dense<0.000000e+00> : vector<32xf32>
      %36 = vector.multi_reduction <add>, %34, %cst_12 [1] : vector<32x32xf32> to vector<32xf32>
      %37 = vector.shape_cast %36 : vector<32xf32> to vector<32x1xf32>
      %38 = arith.addf %35, %37 : vector<32x1xf32>
      %c0_13 = arith.constant 0 : index
      %c0_14 = arith.constant 0 : index
      %39 = vector.load %arg8[%c0_13, %c0_14] : memref<32x1xf32, #tpu.memory_space<vmem>>, vector<32x1xf32>
      tpu.vector_store %arg8[%c0_13, %c0_14], %38 {strides = array<i32>} : memref<32x1xf32, #tpu.memory_space<vmem>>, vector<32x1xf32>,
      %c0_15 = arith.constant 0 : index
      %c0_16 = arith.constant 0 : index
      %40 = vector.load %arg9[%c0_15, %c0_16] : memref<32x1xf32, #tpu.memory_space<vmem>>, vector<32x1xf32>
      %41 = arith.mulf %34, %34 : vector<32x32xf32>
      %cst_17 = arith.constant dense<0.000000e+00> : vector<32xf32>
      %42 = vector.multi_reduction <add>, %41, %cst_17 [1] : vector<32x32xf32> to vector<32xf32>
      %43 = vector.shape_cast %42 : vector<32xf32> to vector<32x1xf32>
      %44 = arith.addf %40, %43 : vector<32x1xf32>
      %c0_18 = arith.constant 0 : index
      %c0_19 = arith.constant 0 : index
      %45 = vector.load %arg9[%c0_18, %c0_19] : memref<32x1xf32, #tpu.memory_space<vmem>>, vector<32x1xf32>
      tpu.vector_store %arg9[%c0_18, %c0_19], %44 {strides = array<i32>} : memref<32x1xf32, #tpu.memory_space<vmem>>, vector<32x1xf32>,
    } else {
    }
    %true = arith.constant true
    %12 = arith.xori %9, %true : i1
    %13 = arith.extui %12 : i1 to i32
    %c0_i32_5 = arith.constant 0 : i32
    %14 = arith.cmpi ne, %13, %c0_i32_5 : i32
    scf.if %14 {
      %c0_8 = arith.constant 0 : index
      %c0_9 = arith.constant 0 : index
      %18 = vector.load %arg8[%c0_8, %c0_9] : memref<32x1xf32, #tpu.memory_space<vmem>>, vector<32x1xf32>
      %cst_10 = arith.constant dense<0.000000e+00> : vector<32xf32>
      %19 = vector.multi_reduction <add>, %6, %cst_10 [1] : vector<32x32xf32> to vector<32xf32>
      %20 = vector.shape_cast %19 : vector<32xf32> to vector<32x1xf32>
      %21 = arith.addf %18, %20 : vector<32x1xf32>
      %c0_11 = arith.constant 0 : index
      %c0_12 = arith.constant 0 : index
      %22 = vector.load %arg8[%c0_11, %c0_12] : memref<32x1xf32, #tpu.memory_space<vmem>>, vector<32x1xf32>
      tpu.vector_store %arg8[%c0_11, %c0_12], %21 {strides = array<i32>} : memref<32x1xf32, #tpu.memory_space<vmem>>, vector<32x1xf32>,
      %c0_13 = arith.constant 0 : index
      %c0_14 = arith.constant 0 : index
      %23 = vector.load %arg9[%c0_13, %c0_14] : memref<32x1xf32, #tpu.memory_space<vmem>>, vector<32x1xf32>
      %24 = arith.mulf %6, %6 : vector<32x32xf32>
      %cst_15 = arith.constant dense<0.000000e+00> : vector<32xf32>
      %25 = vector.multi_reduction <add>, %24, %cst_15 [1] : vector<32x32xf32> to vector<32xf32>
      %26 = vector.shape_cast %25 : vector<32xf32> to vector<32x1xf32>
      %27 = arith.addf %23, %26 : vector<32x1xf32>
      %c0_16 = arith.constant 0 : index
      %c0_17 = arith.constant 0 : index
      %28 = vector.load %arg9[%c0_16, %c0_17] : memref<32x1xf32, #tpu.memory_space<vmem>>, vector<32x1xf32>
      tpu.vector_store %arg9[%c0_16, %c0_17], %27 {strides = array<i32>} : memref<32x1xf32, #tpu.memory_space<vmem>>, vector<32x1xf32>,
    } else {
    }
    %c3_i32_6 = arith.constant 3 : i32
    %15 = arith.cmpi eq, %arg1, %c3_i32_6 : i32
    %16 = arith.extui %15 : i1 to i32
    %c0_i32_7 = arith.constant 0 : i32
    %17 = arith.cmpi ne, %16, %c0_i32_7 : i32
    scf.if %17 {
      %c0_8 = arith.constant 0 : index
      %c0_9 = arith.constant 0 : index
      %18 = memref.load %arg2[%c0_8, %c0_9] : memref<1x1xf32, #tpu.memory_space<smem>>
      %c0_10 = arith.constant 0 : index
      %c0_11 = arith.constant 0 : index
      %19 = vector.load %arg3[%c0_10, %c0_11] : memref<32x128xf32, #tpu.memory_space<vmem>>, vector<32x128xf32>
      %c0_12 = arith.constant 0 : index
      %c0_13 = arith.constant 0 : index
      %20 = vector.load %arg5[%c0_12, %c0_13] : memref<32x128xf32, #tpu.memory_space<vmem>>, vector<32x128xf32>
      %21 = arith.mulf %19, %20 : vector<32x128xf32>
      %cst_14 = arith.constant dense<0.000000e+00> : vector<32xf32>
      %22 = vector.multi_reduction <add>, %21, %cst_14 [1] : vector<32x128xf32> to vector<32xf32>
      %23 = vector.shape_cast %22 : vector<32xf32> to vector<32x1xf32>
      %c0_15 = arith.constant 0 : index
      %c0_16 = arith.constant 0 : index
      %24 = vector.load %arg6[%c0_15, %c0_16] : memref<32x128xf32, #tpu.memory_space<vmem>>, vector<32x128xf32>
      %25 = arith.mulf %19, %24 : vector<32x128xf32>
      %cst_17 = arith.constant dense<0.000000e+00> : vector<32xf32>
      %26 = vector.multi_reduction <add>, %25, %cst_17 [1] : vector<32x128xf32> to vector<32xf32>
      %27 = vector.shape_cast %26 : vector<32xf32> to vector<32x1xf32>
      %28 = math.exp %23 : vector<32x1xf32>
      %c0_18 = arith.constant 0 : index
      %c0_19 = arith.constant 0 : index
      %29 = vector.load %arg9[%c0_18, %c0_19] : memref<32x1xf32, #tpu.memory_space<vmem>>, vector<32x1xf32>
      %c0_20 = arith.constant 0 : index
      %c0_21 = arith.constant 0 : index
      %30 = vector.load %arg8[%c0_20, %c0_21] : memref<32x1xf32, #tpu.memory_space<vmem>>, vector<32x1xf32>
      %cst_22 = arith.constant 9.900000e+01 : f32
      %31 = vector.broadcast %cst_22 : f32 to vector<32x1xf32>
      %32 = arith.divf %30, %31 : vector<32x1xf32>
      %33 = arith.divf %29, %32 : vector<32x1xf32>
      %34 = arith.addf %33, %28 : vector<32x1xf32>
      %35 = math.log %34 : vector<32x1xf32>
      %36 = arith.subf %23, %35 : vector<32x1xf32>
      %37 = arith.subf %27, %35 : vector<32x1xf32>
      %38 = vector.broadcast %18 : f32 to vector<32x1xf32>
      %39 = arith.mulf %38, %36 : vector<32x1xf32>
      %cst_23 = arith.constant 1.000000e+00 : f32
      %40 = arith.subf %cst_23, %18 : f32
      %41 = vector.broadcast %40 : f32 to vector<32x1xf32>
      %42 = arith.mulf %41, %37 : vector<32x1xf32>
      %43 = arith.addf %39, %42 : vector<32x1xf32>
      %cst_24 = arith.constant 0.000000e+00 : f32
      %44 = vector.broadcast %cst_24 : f32 to vector<32x1xf32>
      %45 = arith.subf %44, %43 : vector<32x1xf32>
      %c0_25 = arith.constant 0 : index
      %c0_26 = arith.constant 0 : index
      %46 = vector.load %arg7[%c0_25, %c0_26] : memref<32x1xf32, #tpu.memory_space<vmem>>, vector<32x1xf32>
      tpu.vector_store %arg7[%c0_25, %c0_26], %45 {strides = array<i32>} : memref<32x1xf32, #tpu.memory_space<vmem>>, vector<32x1xf32>,
    } else {
    }
    return
  }
  func.func @transform_0(%arg0: i32, %arg1: i32) -> (i32, i32) {
    %c0_i32 = arith.constant 0 : i32
    %c0_i32_0 = arith.constant 0 : i32
    %c0_i32_1 = arith.constant 0 : i32
    return %c0_i32, %c0_i32_0 : i32, i32
  }
  func.func @transform_1(%arg0: i32, %arg1: i32) -> (i32, i32) {
    %c0_i32 = arith.constant 0 : i32
    %c0_i32_0 = arith.constant 0 : i32
    return %arg0, %c0_i32 : i32, i32
  }
  func.func @transform_2(%arg0: i32, %arg1: i32) -> (i32, i32) {
    %c0_i32 = arith.constant 0 : i32
    %c0_i32_0 = arith.constant 0 : i32
    return %arg1, %c0_i32 : i32, i32
  }
  func.func @transform_3(%arg0: i32, %arg1: i32) -> (i32, i32) {
    %c0_i32 = arith.constant 0 : i32
    %c0_i32_0 = arith.constant 0 : i32
    return %arg0, %c0_i32 : i32, i32
  }
  func.func @transform_4(%arg0: i32, %arg1: i32) -> (i32, i32) {
    %c0_i32 = arith.constant 0 : i32
    %c0_i32_0 = arith.constant 0 : i32
    return %arg0, %c0_i32 : i32, i32
  }
  func.func @transform_5(%arg0: i32, %arg1: i32) -> (i32, i32) {
    %c0_i32 = arith.constant 0 : i32
    %c0_i32_0 = arith.constant 0 : i32
    return %arg0, %c0_i32 : i32, i32
  }
}

</mosaic_0001>

<bundles_post_ra>
// kernel: tpu_custom_call.1
= control target key start
LH: loop header
LB: loop body
LE: loop exit
PB: predicated region body
PF: predicated region fallthrough
CT: control target
= control target key end

     0   :  { %s1851_s0 = inlined_call_operand.<no memory space> [shape: f32[1,1], index: 0, kind: input, shape index: {}]   ;;  %s1852_s1 = inlined_call_operand.hbm [shape: f32[128,128], index: 1, kind: input, shape index: {}]   ;;  %s1853_s2 = inlined_call_operand.hbm [shape: f32[128,128], index: 2, kind: input, shape index: {}]   ;;  %s1854_s3 = inlined_call_operand.hbm [shape: f32[128,128], index: 3, kind: input, shape index: {}]   ;;  %s1855_s4 = inlined_call_operand.hbm [shape: f32[128,128], index: 4, kind: input, shape index: {}]   ;;  %s1856_s5 = inlined_call_operand.vmem [shape: f32[128,1], index: 5, kind: output, shape index: {}]  }
   0x1   :  { %1872 = sst [smem:[#allocation23_spill]] %s1852_s1 }
   0x2   :  { %1873 = sst [smem:[#allocation24_spill]] %s1853_s2 }
   0x3   :  { %10 = sst [smem:[#allocation4]] %s1851_s0 }
   0x4   :  { %11 = vsyncpa [#allocation6], 0 }
   0x5   :  { %13 = vsyncpa [#allocation6 + $0x1], 0 }
   0x6   :  { %14 = vsyncpa [#allocation8], 0 }
   0x7   :  { %16 = vsyncpa [#allocation8 + $0x1], 0 }
   0x8   :  { %17 = vsyncpa [#allocation11], 0 }
   0x9   :  { %19 = vsyncpa [#allocation11 + $0x1], 0  ;;  %s1376_s20 = smov 0   ;;  %s1378_s21 = smov 0  }
   0xa   :  { %s1380_s22 = smov 0   ;;  %s1382_s23 = smov 0  }
   0xb   :  { %s1384_s24 = smov 0   ;;  %s1386_s25 = smov 0  }
   0xc   :  { %s1388_s26 = smov 0   ;;  %s1390_s0 = smov 0  }
   0xd   :  { %s1392_s27 = smov 0   ;;  %s1394_s28 = smov 0  }
   0xe   :  { %s1396_s29 = smov 0  }
   0xf LB: > { %1874 = sst [smem:[#allocation16_spill]] %s1314_s25  ;;  %s1857_s30 = sadd.s32 4294967295, %s1334_s29   ;;  %s1334_s29 = sphi %s1396_s29, %s25_s29   ;;  %s1330_s28 = sphi %s1394_s28, %s1909_s28   ;;  %s1326_s27 = sphi %s1392_s27, %s1915_s27   ;;  %s1322_s0 = sphi %s1390_s0, %s1907_s0   ;;  %s1318_s26 = sphi %s1388_s26, %s1906_s26   ;;  %s1314_s25 = sphi %s1386_s25, %s1905_s25   ;;  %s1310_s24 = sphi %s1384_s24, %s1914_s24   ;;  %s1306_s23 = sphi %s1382_s23, %s1913_s23   ;;  %s1302_s22 = sphi %s1380_s22, %s1912_s22   ;;  %s1298_s21 = sphi %s1378_s21, %s1911_s21   ;;  %s1294_s20 = sphi %s1376_s20, %s1910_s20  }
  0x10   : > { %1875 = sst [smem:[#allocation17_spill]] %s1326_s27  ;;  %s34_s6 = sadd.s32 1, %s1326_s27 }
  0x11   : > { %1876 = sst [smem:[#allocation18_spill]] %s1330_s28  ;;  %p1431_p0 = scmp.ge.s32.totalorder %s34_s6, 4 }
  0x12   : > { %p1859_p1 = scmp.eq.s32.totalorder %s1334_s29, 0  ;;  %p1438_p2 = scmp.eq.s32.totalorder %s1857_s30, 0 }
  0x13   : > { %s91_s9 = sadd.s32 1, %s1302_s22  ;;  %s1917_s6 = smov (%p1431_p0, %s34_s6), 0 }
  0x14   : > { %s1878_s8 = scalar_select %p1438_p2, 1, 0 }
  0x15   : > { %1879 = sst [smem:[#allocation19_spill]] %s1917_s6  ;;  %p98_p3 = scmp.ne.s32.totalorder %s1302_s22, %s1298_s21 }
  0x16   : > { %p104_p4 = scmp.ne.s32.totalorder %s1298_s21, %s1294_s20  ;;  %s88_s10 = ssub.s32 %s1326_s27, %s1917_s6 }
  0x17   : > { %p89_p5 = scmp.eq.s32.totalorder %s88_s10, 0  ;;  %p100_p6 = por %p98_p3, %p1859_p1 }
  0x18   : > { %p1456_p7 = por %p104_p4, %p1438_p2  ;;  %p1858_p8 = scmp.lt.s32.totalorder %s1334_s29, 16 }
  0x19   : > { %s1462_s12 = scalar_select %p89_p5, %s1302_s22, %s91_s9  }
  0x1a   : > { %s1880_s11 = scalar_select %p1456_p7, 1, 0 }
  0x1b   : > { %1881 = sst [smem:[#allocation20_spill]] %s1462_s12  ;;  %s230_s13 = sand.u32 1, %s1334_s29  }
  0x1c   : > { %s232_s14 = sand.u32 1, %s1302_s22   ;;  %s930_s16 = sshll.u32 %s1326_s27, 9 }
  0x1d   : > { %s907_s15 = sshll.u32 %s232_s14, 5  ;;  %s1882_s2 = sld [smem:[#allocation24_spill]] }
  0x1e   : > { %s234_s20 = scalar_lea.vmem [#allocation7], %s907_s15  ;;  %p1476_p9 = pnand %p1858_p8, %p100_p6 }
  0x1f   : > { %s241_s10 = sshll.u32 %s234_s20, 4  ;;  %s1482_s14 = scalar_lea.sflag [#allocation8], %s230_s13  ;;  %s1472_s10 = int_to_ptr.vmem [resolvable:$true] %s241_s10 }
  0x20   : > { %p1114_p13 = pneg %p1476_p9 }
  0x23   : > { %s1470_s19 = scalar_lea.hbm %s1882_s2, %s930_s16  ;;  %s1117_s18 = scalar_lea.hbm %s1882_s2, 2048 }
  0x24   : > { %s1112_s16 = scalar_lea.hbm %s1470_s19, 512  ;;  %p1118_p5 = scmp.lt.u32.totalorder %s1470_s19, %s1882_s2 }
  0x25   : > { %p1113_p12 = scmp.ne.s32.totalorder %s1470_s19, %s1112_s16  ;;  %p1119_p6 = scmp.lt.u32.totalorder %s1117_s18, %s1112_s16 }
  0x26   : > { %p1121_p1 = scmp.lt.u32.totalorder %s1112_s16, %s1470_s19 }
  0x27   : > { %p1115_p3 = pnand %p1114_p13, %p1113_p12  ;;  %p1120_p8 = por %p1119_p6, %p1118_p5 }
  0x29   : > { %p1116_p4 = pneg %p1115_p3  ;;  %p1122_p10 = por %p1121_p1, %p1120_p8 }
  0x2b   : > { %p1123_p11 = pnand %p1122_p10, %p1116_p4 }
  0x2d   : > { %1126 = shalt.err (!%p1123_p11)
}
  0x2e   : > { %s1127_s13 = scalar_lea.vmem %s1472_s10, 512  ;;  %s1336_s15 = smov [#allocation7]  }
  0x2f   : > { %p1128_p12 = scmp.ne.s32.totalorder %s1472_s10, %s1127_s13  ;;  %s1132_s17 = sshll.u32 %s1336_s15, 4  ;;  %s1133_s17 = int_to_ptr.vmem [resolvable:$false] %s1132_s17 }
  0x30   : > { %s1134_s30 = scalar_lea.vmem %s1133_s17, 1024  ;;  %p1135_p2 = scmp.lt.s32.totalorder %s1472_s10, %s1133_s17 }
  0x31   : > { %p1130_p3 = pnand %p1128_p12, %p1114_p13  ;;  %p1136_p5 = scmp.lt.s32.totalorder %s1134_s30, %s1127_s13 }
  0x33   : > { %p1131_p7 = pneg %p1130_p3  ;;  %p1137_p6 = por %p1136_p5, %p1135_p2 }
  0x35   : > { %p1138_p1 = pnand %p1137_p6, %p1131_p7 }
  0x37   : > { %1141 = shalt.err (!%p1138_p1)
}
  0x38   : > { %s1862_s16 = smov 128   ;;  %s1864_s18 = smov 8  }
  0x39   : > { %981 = dma.hbm_to_vmem [thread:$0]  (!%p1476_p9), %s1470_s19, 512, %s1472_s10, %s1482_s14, %s1862_s16, %s1862_s16, %s1864_s18  }
  0x3a   : > { %p1884_p2 = scmp.lt.s32.totalorder %s1334_s29, 17  ;;  %p1885_p7 = scmp.ge.s32.totalorder %s1334_s29, 1 }
  0x3b   : > { %s37_s13 = sadd.s32 1, %s1330_s28  ;;  %s65_s15 = sadd.s32 1, %s1314_s25 }
  0x3c   : > { %p1517_p8 = pnand %p1885_p7, %p1884_p2  ;;  %s1919_s13 = smov (!%p1431_p0, %s37_s13), %s1330_s28 }
  0x3d   : > { %p72_p10 = scmp.ne.s32.totalorder %s1314_s25, %s1310_s24  ;;  %p78_p11 = scmp.ne.s32.totalorder %s1310_s24, %s1306_s23 }
  0x3e   : > { %s1886_s20 = scalar_select %p1517_p8, 1, 0 }
  0x3f   : > { %p39_p13 = scmp.ge.s32.totalorder %s1919_s13, 4  ;;  %s1531_s9 = sand.u32 1, %s1314_s25  }
  0x40   : > { %p1887_p4 = scmp.eq.s32.totalorder %s1334_s29, 0  ;;  %p1888_p12 = scmp.ne.s32.totalorder %s1878_s8, 0 }
  0x41   : > { %s1921_s13 = smov (%p39_p13, %s1919_s13), 0  ;;  %s1544_s7 = sshll.u32 %s1531_s9, 5 }
  0x42   : > { %p74_p9 = por %p1887_p4, %p72_p10  ;;  %p1537_p3 = por %p1888_p12, %p78_p11 }
  0x43   : > { %1890 = sst [smem:[#allocation21_spill]] %s1921_s13  ;;  %s62_s23 = ssub.s32 %s1330_s28, %s1921_s13 }
  0x44   : > { %s1889_s19 = scalar_select %p1537_p3, 1, 0 }
  0x45   : > { %p63_p0 = scmp.eq.s32.totalorder %s62_s23, 0  ;;  %s1549_s10 = sshll.u32 %s1330_s28, 9 }
  0x46   : > { %s1891_s1 = sld [smem:[#allocation23_spill]]  ;;  %s213_s16 = scalar_lea.vmem [#allocation5], %s1544_s7 }
  0x47   : > { %s220_s18 = sshll.u32 %s213_s16, 4  ;;  %p1893_p5 = scmp.lt.s32.totalorder %s1334_s29, 16  ;;  %s1561_s18 = int_to_ptr.vmem [resolvable:$true] %s220_s18 }
  0x48   : > { %s1559_s2 = scalar_select %p63_p0, %s1314_s25, %s65_s15  }
  0x49   : > { %p1565_p6 = pnand %p1893_p5, %p74_p9  ;;  %s1573_s30 = scalar_lea.hbm %s1854_s3, %s1549_s10 }
  0x4a   : > { %1892 = sst [smem:[#allocation22_spill]] %s1559_s2  ;;  %s255_s6 = scalar_lea.vmem [#allocation9], %s1544_s7 }
  0x4b   : > { %s1576_s28 = sshll.u32 %s255_s6, 4  ;;  %s210_s16 = scalar_lea.sflag [#allocation6], %s1531_s9  ;;  %s1612_s28 = int_to_ptr.vmem [resolvable:$true] %s1576_s28 }
  0x4c   : > { %s1555_s8 = scalar_lea.hbm %s1891_s1, %s1549_s10  ;;  %p1583_p2 = pneg %p1565_p6 }
  0x4d   : > { %s1142_s15 = scalar_lea.hbm %s1555_s8, 512  ;;  %s1147_s17 = scalar_lea.hbm %s1891_s1, 2048 }
  0x4e   : > { %p1143_p1 = scmp.ne.s32.totalorder %s1555_s8, %s1142_s15  ;;  %p1148_p11 = scmp.lt.u32.totalorder %s1555_s8, %s1891_s1 }
  0x4f   : > { %p1149_p13 = scmp.lt.u32.totalorder %s1147_s17, %s1142_s15  ;;  %p1151_p9 = scmp.lt.u32.totalorder %s1142_s15, %s1555_s8 }
  0x50   : > { %p1145_p7 = pnand %p1583_p2, %p1143_p1 }
  0x51   : > { %p1150_p4 = por %p1149_p13, %p1148_p11 }
  0x52   : > { %p1146_p10 = pneg %p1145_p7 }
  0x53   : > { %p1152_p12 = por %p1151_p9, %p1150_p4 }
  0x55   : > { %p1153_p0 = pnand %p1152_p12, %p1146_p10 }
  0x57   : > { %1156 = shalt.err (!%p1153_p0)
}
  0x58   : > { %s1157_s6 = scalar_lea.vmem %s1561_s18, 512  ;;  %s1339_s2 = smov [#allocation5]  }
  0x59   : > { %p1158_p5 = scmp.ne.s32.totalorder %s1561_s18, %s1157_s6  ;;  %s1162_s13 = sshll.u32 %s1339_s2, 4  ;;  %s1163_s13 = int_to_ptr.vmem [resolvable:$false] %s1162_s13 }
  0x5a   : > { %s1164_s25 = scalar_lea.vmem %s1163_s13, 1024  ;;  %p1165_p3 = scmp.lt.s32.totalorder %s1561_s18, %s1163_s13 }
  0x5b   : > { %p1160_p1 = pnand %p1158_p5, %p1583_p2  ;;  %p1166_p8 = scmp.lt.s32.totalorder %s1164_s25, %s1157_s6 }
  0x5d   : > { %p1161_p7 = pneg %p1160_p1  ;;  %p1167_p11 = por %p1166_p8, %p1165_p3 }
  0x5f   : > { %p1168_p13 = pnand %p1167_p11, %p1161_p7 }
  0x61   : > { %1171 = shalt.err (!%p1168_p13)
}
  0x62   : > { %s1896_s12 = smov 8   ;;  %s1897_s15 = smov 128  }
  0x63   : > { %978 = dma.hbm_to_vmem [thread:$0]  (!%p1565_p6), %s1555_s8, 512, %s1561_s18, %s210_s16, %s1897_s15, %s1897_s15, %s1896_s12  }
  0x64   : > { %s1172_s17 = scalar_lea.hbm %s1573_s30, 512  ;;  %s1177_s13 = scalar_lea.hbm %s1854_s3, 2048 }
  0x65   : > { %p1173_p8 = scmp.ne.s32.totalorder %s1573_s30, %s1172_s17  ;;  %p1178_p4 = scmp.lt.u32.totalorder %s1573_s30, %s1854_s3 }
  0x66   : > { %p1179_p9 = scmp.lt.u32.totalorder %s1177_s13, %s1172_s17  ;;  %p1181_p0 = scmp.lt.u32.totalorder %s1172_s17, %s1573_s30 }
  0x67   : > { %p1175_p3 = pnand %p1173_p8, %p1583_p2 }
  0x68   : > { %p1180_p12 = por %p1179_p9, %p1178_p4 }
  0x69   : > { %p1176_p10 = pneg %p1175_p3 }
  0x6a   : > { %p1182_p5 = por %p1181_p0, %p1180_p12 }
  0x6c   : > { %p1183_p1 = pnand %p1182_p5, %p1176_p10 }
  0x6e   : > { %1186 = shalt.err (!%p1183_p1)
}
  0x6f   : > { %s1187_s18 = scalar_lea.vmem %s1612_s28, 512  ;;  %s1340_s8 = smov [#allocation9]  }
  0x70   : > { %p1188_p7 = scmp.ne.s32.totalorder %s1612_s28, %s1187_s18  ;;  %s1192_s16 = sshll.u32 %s1340_s8, 4  ;;  %s1193_s16 = int_to_ptr.vmem [resolvable:$false] %s1192_s16 }
  0x71   : > { %s1194_s1 = scalar_lea.vmem %s1193_s16, 1024  ;;  %p1195_p8 = scmp.lt.s32.totalorder %s1612_s28, %s1193_s16 }
  0x72   : > { %p1190_p11 = pnand %p1188_p7, %p1583_p2  ;;  %p1196_p3 = scmp.lt.s32.totalorder %s1194_s1, %s1187_s18 }
  0x74   : > { %p1191_p13 = pneg %p1190_p11  ;;  %p1197_p4 = por %p1196_p3, %p1195_p8 }
  0x76   : > { %p1198_p9 = pnand %p1197_p4, %p1191_p13 }
  0x78   : > { %1201 = shalt.err (!%p1198_p9)
}
  0x79   : > { %984 = dma.hbm_to_vmem [thread:$0]  (!%p1565_p6), %s1573_s30, 512, %s1612_s28, %s1482_s14, %s1897_s15, %s1897_s15, %s1896_s12  }
  0x7a   : > { %s1643_s2 = scalar_lea.hbm %s1855_s4, %s1549_s10  ;;  %s276_s13 = scalar_lea.vmem [#allocation10], %s1544_s7 }
  0x7b   : > { %s283_s25 = sshll.u32 %s276_s13, 4  ;;  %s273_s18 = scalar_lea.sflag [#allocation11], %s1531_s9  ;;  %s1646_s25 = int_to_ptr.vmem [resolvable:$true] %s283_s25 }
  0x7c   : > { %s1202_s8 = scalar_lea.hbm %s1643_s2, 512  ;;  %s1207_s30 = scalar_lea.hbm %s1855_s4, 2048 }
  0x7d   : > { %p1203_p10 = scmp.ne.s32.totalorder %s1643_s2, %s1202_s8  ;;  %p1208_p5 = scmp.lt.u32.totalorder %s1643_s2, %s1855_s4 }
  0x7e   : > { %p1209_p1 = scmp.lt.u32.totalorder %s1207_s30, %s1202_s8  ;;  %p1211_p11 = scmp.lt.u32.totalorder %s1202_s8, %s1643_s2 }
  0x7f   : > { %p1205_p12 = pnand %p1203_p10, %p1583_p2 }
  0x80   : > { %p1210_p7 = por %p1209_p1, %p1208_p5 }
  0x81   : > { %p1206_p0 = pneg %p1205_p12 }
  0x82   : > { %p1212_p13 = por %p1211_p11, %p1210_p7 }
  0x84   : > { %p1213_p8 = pnand %p1212_p13, %p1206_p0 }
  0x86   : > { %1216 = shalt.err (!%p1213_p8)
}
  0x87   : > { %s1217_s7 = scalar_lea.vmem %s1646_s25, 512  ;;  %s1341_s1 = smov [#allocation10]  }
  0x88   : > { %p1218_p3 = scmp.ne.s32.totalorder %s1646_s25, %s1217_s7  ;;  %s1222_s17 = sshll.u32 %s1341_s1, 4  ;;  %s1223_s17 = int_to_ptr.vmem [resolvable:$false] %s1222_s17 }
  0x89   : > { %s1224_s6 = scalar_lea.vmem %s1223_s17, 1024  ;;  %p1225_p10 = scmp.lt.s32.totalorder %s1646_s25, %s1223_s17 }
  0x8a   : > { %p1220_p4 = pnand %p1218_p3, %p1583_p2  ;;  %p1226_p12 = scmp.lt.s32.totalorder %s1224_s6, %s1217_s7 }
  0x8c   : > { %p1221_p9 = pneg %p1220_p4  ;;  %p1227_p5 = por %p1226_p12, %p1225_p10 }
  0x8e   : > { %p1228_p1 = pnand %p1227_p5, %p1221_p9 }
  0x90   : > { %1231 = shalt.err (!%p1228_p1)
}
  0x91   : > { %987 = dma.hbm_to_vmem [thread:$0]  (!%p1565_p6), %s1643_s2, 512, %s1646_s25, %s273_s18, %s1897_s15, %s1897_s15, %s1896_s12  }
  0x92   : > { %p1898_p2 = scmp.ne.s32.totalorder %s1886_s20, 0 }
  0x93   : > { %s297_s27 = sand.u32 (!%p1898_p2), 1, %s1310_s24   ;;  %p1899_p0 = scmp.ne.s32.totalorder (!%p1898_p2), %s1889_s19, 0 }
  0x94   : > { %295 = sbr.rel (%p1898_p2) target bundleno = 929 (0x3a1), region = 40  ;;  %s917_s13 = sshll.u32 (!%p1898_p2), %s297_s27, 5 }
  0x95   : > { %s298_s8 = scalar_lea.sflag (!%p1898_p2), [#allocation6], %s297_s27  ;;  %s1678_s28 = scalar_lea.vmem (!%p1898_p2), [#allocation5], %s917_s13 }
  0x9b   : > { %1277 = dma.done.wait (%p1899_p0), %s298_s8, 512  }
  0x9c   : > { %1279 = vsyncadd (%p1899_p0), %s298_s8, 4294966784  ;;  %s1900_s9 = sadd.s32 4294967295, %s1334_s29   ;;  %s308_s12 = sand.u32 1, %s1298_s21  }
  0x9d   : > { %s306_s23 = sand.u32 1, %s1900_s9   ;;  %s918_s20 = sshll.u32 %s308_s12, 5 }
  0x9e   : > { %s307_s15 = scalar_lea.sflag [#allocation8], %s306_s23  ;;  %s1687_s2 = scalar_lea.vmem [#allocation7], %s918_s20 }
  0x9f   : > { %p1901_p6 = scmp.ne.s32.totalorder %s1880_s11, 0 }
  0xa1   : > { %1281 = dma.done.wait (%p1901_p6), %s307_s15, 512  }
  0xa2   : > { %1283 = vsyncadd (%p1901_p6), %s307_s15, 4294966784  ;;  %s1693_s25 = scalar_lea.vmem [#allocation9], %s917_s13 }
  0xa3   : > { %1285 = dma.done.wait (%p1899_p0), %s307_s15, 512  }
  0xa4   : > { %1287 = vsyncadd (%p1899_p0), %s307_s15, 4294966784  ;;  %s325_s18 = scalar_lea.sflag [#allocation11], %s297_s27  ;;  %s1699_s14 = scalar_lea.vmem [#allocation10], %s917_s13 }
  0xa5   : > { %1289 = dma.done.wait (%p1899_p0), %s325_s18, 512  }
  0xa6   : > { %1291 = vsyncadd (%p1899_p0), %s325_s18, 4294966784  ;;  %s921_s11 = sshll.u32 %s1322_s0, 2  ;;  %p923_p11 = scmp.ne.s32.totalorder %s1318_s26, 0 }
  0xa7   : > { %p375_p7 = scmp.lt.s32.totalorder %s921_s11, 15  ;;  %vm384_vm0 = vcmask (!%p923_p11), 7168   ;;  %v1342_v0 = vmov (!%p923_p11), 0.0  }
  0xa8   : > { %383 = sbr.rel (%p923_p11) target bundleno = 175 (0xaf), region = 60  ;;  %385 = vst.msk [vmem:[#allocation2] sm:$0xff] (!%p923_p11), %vm384_vm0, %v1342_v0  ;;  %386 = vst.msk [vmem:[#allocation2 + $0x8] sm:$0xff] (!%p923_p11), %vm384_vm0, %v1342_v0 }
  0xa9   : > { %s1923_s11 = smov (!%p375_p7, %s921_s11), 15  ;;  %387 = vst.msk [vmem:[#allocation2 + $0x10] sm:$0xff] (!%p923_p11), %vm384_vm0, %v1342_v0  ;;  %388 = vst.msk [vmem:[#allocation2 + $0x18] sm:$0xff] (!%p923_p11), %vm384_vm0, %v1342_v0 }
  0xaa   : > { %s922_s30 = sshll.u32 %s1923_s11, 3  ;;  %389 = vst.msk [vmem:[#allocation3] sm:$0xff] (!%p923_p11), %vm384_vm0, %v1342_v0  ;;  %390 = vst.msk [vmem:[#allocation3 + $0x8] sm:$0xff] (!%p923_p11), %vm384_vm0, %v1342_v0 }
  0xab   : > { %s1709_s7 = scalar_lea.vmem %s1856_s5, %s922_s30  ;;  %391 = vst.msk [vmem:[#allocation3 + $0x10] sm:$0xff] (!%p923_p11), %vm384_vm0, %v1342_v0  ;;  %392 = vst.msk [vmem:[#allocation3 + $0x18] sm:$0xff] (!%p923_p11), %vm384_vm0, %v1342_v0 }
  0xaf PF: > { %v397_v1 = vld [vmem:[%s1687_s2] sm:$0xff]  ;;  %v398_v2 = vld [vmem:[%s1687_s2 + $0x8] sm:$0xff]  ;;  %v399_v3 = vld [vmem:[%s1687_s2 + $0x10] sm:$0xff]  ;;  %p494_p13 = scmp.eq.s32.totalorder %s1322_s0, %s1318_s26  ;;  %p495_p8 = scmp.eq.s32.totalorder %s1318_s26, 3 }
  0xb0   : > { %v955_v4 = vpack.c.bf16 %v398_v2, %v397_v1  ;;  %v400_v5 = vld [vmem:[%s1687_s2 + $0x18] sm:$0xff]  ;;  %v393_v6 = vld [vmem:[%s1678_s28] sm:$0xff]  ;;  %v395_v7 = vld [vmem:[%s1678_s28 + $0x10] sm:$0xff] }
  0xb1   : > { %v959_v8 = vpack.c.bf16 %v400_v5, %v399_v3  ;;  %949 = vmatprep.mubr.f32.mxu0 %v393_v6  ;;  %952 = vmatprep.mubr.f32.mxu1 %v395_v7  ;;  %v394_v9 = vld [vmem:[%s1678_s28 + $0x8] sm:$0xff]  ;;  %v396_v10 = vld [vmem:[%s1678_s28 + $0x18] sm:$0xff]  ;;  %p1723_p3 = por %p495_p8, %p494_p13 }
  0xb2   : > { %956 = vmatprep.subr.bf16.mxu0 %v955_v4  ;;  %963 = vmatprep.subr.bf16.mxu1 %v955_v4  ;;  %s924_s1 = sshll.u32 (%p1723_p3), %s1318_s26, 5  ;;  %v501_v23 = vlaneseq (%p1723_p3)  ;;  %s925_s17 = sshll.u32 (%p1723_p3), %s1322_s0, 5  ;;  %vm535_vm1 = vcmask (%p1723_p3), 261120   ;;  %v531_v52 = vld [vmem:[#allocation2] sm:$0xff] (%p1723_p3)  ;;  %v533_v53 = vld [vmem:[#allocation2 + $0x10] sm:$0xff] (%p1723_p3)  ;;  %vm552_vm11 = vcmask (%p1723_p3), 7168  }
  0xb3   : > { %958 = vmatpush3.bf16.xpose.msra.mxu0 %v955_v4  ;;  %965 = vmatpush3.bf16.xpose.msra.mxu1 %v955_v4  ;;  %v503_v24 = vstv (%p1723_p3), %s924_s1  ;;  %v511_v25 = vstv (%p1723_p3), %s925_s17  ;;  %v532_v57 = vld [vmem:[#allocation2 + $0x8] sm:$0xff] (%p1723_p3)  ;;  %v534_v59 = vld [vmem:[#allocation2 + $0x18] sm:$0xff] (%p1723_p3)  ;;  %v557_v63 = vld [vmem:[#allocation3] sm:$0xff] (%p1723_p3) }
  0xb4   : > { %960 = vmatprep.subr.bf16.mxu0 %v959_v8  ;;  %964 = vmatprep.subr.bf16.mxu1 %v959_v8  ;;  %v502_v26 = vand.u32 (%p1723_p3), 127, %v501_v23  ;;  %v507_v27 = vshrl.u32 (%p1723_p3), %v501_v23, 7  ;;  %v558_v1 = vld [vmem:[#allocation3 + $0x8] sm:$0xff] (%p1723_p3)  ;;  %v559_v5 = vld [vmem:[#allocation3 + $0x10] sm:$0xff] (%p1723_p3)  ;;  %v560_v7 = vld [vmem:[#allocation3 + $0x18] sm:$0xff] (%p1723_p3) }
  0xb6   : > { %v504_v28 = vadd.s32 (%p1723_p3), %v503_v24, %v502_v26  ;;  %v509_v29 = vadd.s32 (%p1723_p3), 16, %v507_v27  ;;  %v512_v30 = vadd.s32 (%p1723_p3), %v511_v25, %v507_v27  ;;  %v510_v31 = vadd.s32 (%p1723_p3), 24, %v507_v27 }
  0xb7   : > { %v508_v32 = vadd.s32 (%p1723_p3), 8, %v507_v27 }
  0xb8   : > { %v514_v33 = vadd.s32 (%p1723_p3), %v511_v25, %v509_v29  ;;  %vm520_vm2 = vcmp.lt.s32.totalorder (%p1723_p3), %v504_v28, 100  ;;  %vm516_vm3 = vcmp.ne.s32.totalorder (%p1723_p3), %v504_v28, %v512_v30  ;;  %v515_v34 = vadd.s32 (%p1723_p3), %v511_v25, %v510_v31 }
  0xb9   : > { %vm523_vm4 = vmand (%p1723_p3), %vm516_vm3, %vm520_vm2  ;;  %v513_v35 = vadd.s32 (%p1723_p3), %v511_v25, %v508_v32 }
  0xba   : > { %vm518_vm5 = vcmp.ne.s32.totalorder (%p1723_p3), %v504_v28, %v514_v33  ;;  %vm519_vm6 = vcmp.ne.s32.totalorder (%p1723_p3), %v504_v28, %v515_v34 }
  0xbb   : > { %962 = vmatpush3.bf16.xpose.msra.mxu0 %v959_v8  ;;  %966 = vmatpush3.bf16.xpose.msra.mxu1 %v959_v8  ;;  %vm525_vm7 = vmand (%p1723_p3), %vm518_vm5, %vm520_vm2  ;;  %vm517_vm8 = vcmp.ne.s32.totalorder (%p1723_p3), %v504_v28, %v513_v35 }
  0xbc   : > { %vm526_vm9 = vmand (%p1723_p3), %vm519_vm6, %vm520_vm2 }
  0xbd   : > { %vm524_vm10 = vmand (%p1723_p3), %vm517_vm8, %vm520_vm2 }
  0xc2   : > { %950 = vmatmul.mubr.f32.vlgmr.msra.gmra.mrb[0].mxu0 %v394_v9  ;;  %953 = vmatmul.mubr.f32.vlgmr.msra.gmra.mrb[0].mxu1 %v396_v10 }
 0x195   : > { %v951_v11 = vpop.f32.mrb[0].mxu0  ;;  %v954_v12 = vpop.f32.mrb[0].mxu1 }
 0x196   : > { %v488_v13 = vmul.f32 1.442695, %v951_v11  ;;  %v492_v14 = vmul.f32 1.442695, %v954_v12  ;;  %v467_v15 = vpop.f32.mrb[1].mxu0  ;;  %v477_v16 = vpop.f32.mrb[1].mxu1 }
 0x197   : > { %v486_v17 = vmul.f32 1.442695, %v467_v15  ;;  %v490_v18 = vmul.f32 1.442695, %v477_v16 }
 0x198   : > { %1080 = vpow2.f32 %v488_v13 }
 0x199   : > { %1082 = vpow2.f32 %v492_v14 }
 0x19a   : > { %1084 = vpow2.f32 %v486_v17 }
 0x19b   : > { %1086 = vpow2.f32 %v490_v18 }
 0x19f   : > { %499 = sbr.rel (!%p1723_p3) target bundleno = 581 (0x245), region = 64 }
 0x1a2   : > { %v1727_v19 = vpop.eup %1080 }
 0x1a3   : > { %v1729_v20 = vpop.eup %1082  ;;  %v528_v42 = vsel (%p1723_p3), %vm524_vm10, %v1727_v19, 0.0 }
 0x1a4   : > { %v1731_v21 = vpop.eup %1084  ;;  %v530_v41 = vsel (%p1723_p3), %vm526_vm9, %v1729_v20, 0.0  ;;  %v539_v44 = vsel (%p1723_p3), %vm535_vm1, %v528_v42, 0.0  ;;  %v562_v45 = vmul.f32 (%p1723_p3), %v528_v42, %v528_v42 }
 0x1a5   : > { %v1733_v22 = vpop.eup %1086  ;;  %v527_v36 = vsel (%p1723_p3), %vm523_vm4, %v1731_v21, 0.0  ;;  %v545_v43 = vsel (%p1723_p3), %vm535_vm1, %v530_v41, 0.0  ;;  %v564_v49 = vmul.f32 (%p1723_p3), %v530_v41, %v530_v41 }
 0x1a6   : > { %v536_v37 = vsel %vm535_vm1, %v527_v36, 0.0  ;;  %v529_v38 = vsel %vm525_vm7, %v1733_v22, 0.0  ;;  %v561_v40 = vmul.f32 %v527_v36, %v527_v36  ;;  %v568_v48 = vsel %vm535_vm1, %v562_v45, 0.0 }
 0x1a7   : > { %537 = vadd.xlane.f32.xlu0 %v536_v37  ;;  %v542_v39 = vsel %vm535_vm1, %v529_v38, 0.0  ;;  %v563_v46 = vmul.f32 %v529_v38, %v529_v38  ;;  %v574_v51 = vsel %vm535_vm1, %v564_v49, 0.0 }
 0x1a8   : > { %543 = vadd.xlane.f32.xlu1 %v542_v39  ;;  %v565_v47 = vsel %vm535_vm1, %v561_v40, 0.0 }
 0x1a9   : > { %v571_v50 = vsel %vm535_vm1, %v563_v46, 0.0 }
 0x1ab   : > { %540 = vadd.xlane.f32.xlu0 %v539_v44 }
 0x1ac   : > { %546 = vadd.xlane.f32.xlu1 %v545_v43 }
 0x1af   : > { %566 = vadd.xlane.f32.xlu0 %v565_v47 }
 0x1b0   : > { %569 = vadd.xlane.f32.xlu1 %v568_v48 }
 0x1b3   : > { %572 = vadd.xlane.f32.xlu0 %v571_v50 }
 0x1b4   : > { %575 = vadd.xlane.f32.xlu1 %v574_v51 }
 0x234   : > { %v538_v54 = vpop.xlane.xlu0 %537 }
 0x235   : > { %v548_v55 = vadd.f32 %v538_v54, %v531_v52  ;;  %v544_v56 = vpop.xlane.xlu1 %543 }
 0x236   : > { %v550_v58 = vadd.f32 %v544_v56, %v533_v53 }
 0x237   : > { %553 = vst.msk [vmem:[#allocation2] sm:$0xff] %vm552_vm11, %v548_v55 }
 0x238   : > { %v541_v60 = vpop.xlane.xlu0 %540  ;;  %555 = vst.msk [vmem:[#allocation2 + $0x10] sm:$0xff] %vm552_vm11, %v550_v58 }
 0x239   : > { %v549_v61 = vadd.f32 %v541_v60, %v532_v57  ;;  %v547_v62 = vpop.xlane.xlu1 %546 }
 0x23a   : > { %v551_v0 = vadd.f32 %v547_v62, %v534_v59 }
 0x23b   : > { %554 = vst.msk [vmem:[#allocation2 + $0x8] sm:$0xff] %vm552_vm11, %v549_v61 }
 0x23c   : > { %v567_v2 = vpop.xlane.xlu0 %566  ;;  %556 = vst.msk [vmem:[#allocation2 + $0x18] sm:$0xff] %vm552_vm11, %v551_v0 }
 0x23d   : > { %v577_v3 = vadd.f32 %v567_v2, %v557_v63  ;;  %v570_v4 = vpop.xlane.xlu1 %569 }
 0x23e   : > { %v578_v6 = vadd.f32 %v570_v4, %v558_v1 }
 0x23f   : > { %581 = vst.msk [vmem:[#allocation3] sm:$0xff] %vm552_vm11, %v577_v3 }
 0x240   : > { %v573_v8 = vpop.xlane.xlu0 %572  ;;  %582 = vst.msk [vmem:[#allocation3 + $0x8] sm:$0xff] %vm552_vm11, %v578_v6 }
 0x241   : > { %v579_v9 = vadd.f32 %v573_v8, %v559_v5  ;;  %v576_v10 = vpop.xlane.xlu1 %575 }
 0x242   : > { %v580_v11 = vadd.f32 %v576_v10, %v560_v7 }
 0x243   : > { %583 = vst.msk [vmem:[#allocation3 + $0x10] sm:$0xff] %vm552_vm11, %v579_v9 }
 0x244   : > { %584 = vst.msk [vmem:[#allocation3 + $0x18] sm:$0xff] %vm552_vm11, %v580_v11 }
 0x245 PF: > { %587 = sbr.rel (%p1723_p3) target bundleno = 740 (0x2e4), region = 68  ;;  %vm592_vm12 = vcmask (!%p1723_p3), 261120   ;;  %v619_v16 = vmul.f32 (!%p1723_p3), %v1727_v19, %v1727_v19  ;;  %v618_v17 = vmul.f32 (!%p1723_p3), %v1731_v21, %v1731_v21  ;;  %v621_v24 = vmul.f32 (!%p1723_p3), %v1729_v20, %v1729_v20  ;;  %v588_v27 = vld [vmem:[#allocation2] sm:$0xff] (!%p1723_p3)  ;;  %v591_v32 = vld [vmem:[#allocation2 + $0x18] sm:$0xff] (!%p1723_p3) }
 0x246   : > { %v599_v12 = vsel (!%p1723_p3), %vm592_vm12, %v1733_v22, 0.0  ;;  %v593_v13 = vsel (!%p1723_p3), %vm592_vm12, %v1731_v21, 0.0  ;;  %v602_v14 = vsel (!%p1723_p3), %vm592_vm12, %v1729_v20, 0.0  ;;  %v596_v15 = vsel (!%p1723_p3), %vm592_vm12, %v1727_v19, 0.0  ;;  %v590_v21 = vld [vmem:[#allocation2 + $0x10] sm:$0xff] (!%p1723_p3)  ;;  %v589_v20 = vld [vmem:[#allocation2 + $0x8] sm:$0xff] (!%p1723_p3) }
 0x247   : > { %600 = vadd.xlane.f32.xlu1 (!%p1723_p3), %v599_v12  ;;  %594 = vadd.xlane.f32.xlu0 (!%p1723_p3), %v593_v13  ;;  %v625_v18 = vsel (!%p1723_p3), %vm592_vm12, %v619_v16, 0.0  ;;  %v622_v23 = vsel (!%p1723_p3), %vm592_vm12, %v618_v17, 0.0  ;;  %v620_v25 = vmul.f32 (!%p1723_p3), %v1733_v22, %v1733_v22  ;;  %v631_v26 = vsel (!%p1723_p3), %vm592_vm12, %v621_v24, 0.0  ;;  %v615_v36 = vld [vmem:[#allocation3 + $0x8] sm:$0xff] (!%p1723_p3)  ;;  %v614_v37 = vld [vmem:[#allocation3] sm:$0xff] (!%p1723_p3) }
 0x248   : > { %vm609_vm13 = vcmask (!%p1723_p3), 7168  }
 0x249   : > { %v628_v19 = vsel (!%p1723_p3), %vm592_vm12, %v620_v25, 0.0 }
 0x24a   : > { %v616_v43 = vld [vmem:[#allocation3 + $0x10] sm:$0xff] (!%p1723_p3) }
 0x24b   : > { %603 = vadd.xlane.f32.xlu1 (!%p1723_p3), %v602_v14  ;;  %597 = vadd.xlane.f32.xlu0 (!%p1723_p3), %v596_v15  ;;  %v617_v42 = vld [vmem:[#allocation3 + $0x18] sm:$0xff] (!%p1723_p3) }
 0x24f   : > { %626 = vadd.xlane.f32.xlu1 %v625_v18  ;;  %623 = vadd.xlane.f32.xlu0 %v622_v23 }
 0x253   : > { %632 = vadd.xlane.f32.xlu1 %v631_v26  ;;  %629 = vadd.xlane.f32.xlu0 %v628_v19 }
 0x2d4   : > { %v601_v28 = vpop.xlane.xlu1 %600  ;;  %v595_v29 = vpop.xlane.xlu0 %594 }
 0x2d5   : > { %v607_v30 = vadd.f32 %v601_v28, %v590_v21  ;;  %v605_v31 = vadd.f32 %v595_v29, %v588_v27 }
 0x2d7   : > { %612 = vst.msk [vmem:[#allocation2 + $0x10] sm:$0xff] %vm609_vm13, %v607_v30  ;;  %610 = vst.msk [vmem:[#allocation2] sm:$0xff] %vm609_vm13, %v605_v31 }
 0x2d8   : > { %v604_v22 = vpop.xlane.xlu1 %603  ;;  %v598_v33 = vpop.xlane.xlu0 %597 }
 0x2d9   : > { %v608_v34 = vadd.f32 %v604_v22, %v591_v32  ;;  %v606_v35 = vadd.f32 %v598_v33, %v589_v20 }
 0x2db   : > { %613 = vst.msk [vmem:[#allocation2 + $0x18] sm:$0xff] %vm609_vm13, %v608_v34  ;;  %611 = vst.msk [vmem:[#allocation2 + $0x8] sm:$0xff] %vm609_vm13, %v606_v35 }
 0x2dc   : > { %v627_v38 = vpop.xlane.xlu1 %626  ;;  %v624_v39 = vpop.xlane.xlu0 %623 }
 0x2dd   : > { %v635_v40 = vadd.f32 %v627_v38, %v615_v36  ;;  %v634_v41 = vadd.f32 %v624_v39, %v614_v37 }
 0x2df   : > { %639 = vst.msk [vmem:[#allocation3 + $0x8] sm:$0xff] %vm609_vm13, %v635_v40  ;;  %638 = vst.msk [vmem:[#allocation3] sm:$0xff] %vm609_vm13, %v634_v41 }
 0x2e0   : > { %v633_v44 = vpop.xlane.xlu1 %632  ;;  %v630_v45 = vpop.xlane.xlu0 %629 }
 0x2e1   : > { %v637_v46 = vadd.f32 %v633_v44, %v617_v42  ;;  %v636_v47 = vadd.f32 %v630_v45, %v616_v43 }
 0x2e3   : > { %641 = vst.msk [vmem:[#allocation3 + $0x18] sm:$0xff] %vm609_vm13, %v637_v46  ;;  %640 = vst.msk [vmem:[#allocation3 + $0x10] sm:$0xff] %vm609_vm13, %v636_v47 }
 0x2e4 PF: > { %p926_p4 = scmp.ne.s32.totalorder %s1318_s26, 3 }
 0x2e5   : > { %v648_v48 = vld [vmem:[%s1678_s28 + $0x10] sm:$0xff] (!%p926_p4)  ;;  %v646_v50 = vld [vmem:[%s1678_s28] sm:$0xff] (!%p926_p4)  ;;  %v649_v53 = vld [vmem:[%s1678_s28 + $0x18] sm:$0xff] (!%p926_p4)  ;;  %s645_s26 = sld [smem:[#allocation4]] (!%p926_p4)  ;;  %vm750_vm14 = vcmask (!%p926_p4), 7168  }
 0x2e6   : > { %644 = sbr.rel (%p926_p4) target bundleno = 929 (0x3a1), region = 72  ;;  %v652_v49 = vld [vmem:[%s1693_s25 + $0x10] sm:$0xff] (!%p926_p4)  ;;  %v650_v52 = vld [vmem:[%s1693_s25] sm:$0xff] (!%p926_p4)  ;;  %v653_v54 = vld [vmem:[%s1693_s25 + $0x18] sm:$0xff] (!%p926_p4) }
 0x2e7   : > { %v656_v51 = vmul.f32 (!%p926_p4), %v652_v49, %v648_v48  ;;  %v654_v55 = vmul.f32 (!%p926_p4), %v650_v52, %v646_v50  ;;  %v647_v56 = vld [vmem:[%s1678_s28 + $0x8] sm:$0xff] (!%p926_p4)  ;;  %v657_v58 = vmul.f32 (!%p926_p4), %v653_v54, %v649_v53  ;;  %v666_v61 = vld [vmem:[%s1699_s14] sm:$0xff] (!%p926_p4)  ;;  %v669_v0 = vld [vmem:[%s1699_s14 + $0x18] sm:$0xff] (!%p926_p4) }
 0x2e8   : > { %v651_v57 = vld [vmem:[%s1693_s25 + $0x8] sm:$0xff] (!%p926_p4)  ;;  %v670_v63 = vmul.f32 (!%p926_p4), %v666_v61, %v646_v50  ;;  %v668_v1 = vld [vmem:[%s1699_s14 + $0x10] sm:$0xff] (!%p926_p4)  ;;  %v673_v2 = vmul.f32 (!%p926_p4), %v669_v0, %v649_v53  ;;  %v694_v5 = vld [vmem:[#allocation2] sm:$0xff] (!%p926_p4) }
 0x2e9   : > { %662 = vadd.xlane.f32.xlu1 (!%p926_p4), %v656_v51  ;;  %658 = vadd.xlane.f32.xlu0 (!%p926_p4), %v654_v55  ;;  %v655_v59 = vmul.f32 (!%p926_p4), %v651_v57, %v647_v56  ;;  %v667_v60 = vld [vmem:[%s1699_s14 + $0x8] sm:$0xff] (!%p926_p4)  ;;  %v672_v3 = vmul.f32 (!%p926_p4), %v668_v1, %v648_v48  ;;  %v696_v4 = vld [vmem:[#allocation2 + $0x10] sm:$0xff] (!%p926_p4)  ;;  %v699_v7 = vmul.f32 (!%p926_p4), 0.01010101, %v694_v5  ;;  %v697_v8 = vld [vmem:[#allocation2 + $0x18] sm:$0xff] (!%p926_p4) }
 0x2ea   : > { %v671_v62 = vmul.f32 (!%p926_p4), %v667_v60, %v647_v56  ;;  %v701_v6 = vmul.f32 (!%p926_p4), 0.01010101, %v696_v4  ;;  %v695_v9 = vld [vmem:[#allocation2 + $0x8] sm:$0xff] (!%p926_p4)  ;;  %v702_v10 = vmul.f32 (!%p926_p4), 0.01010101, %v697_v8  ;;  %v692_v25 = vld [vmem:[#allocation3 + $0x10] sm:$0xff] (!%p926_p4) }
 0x2eb   : > { %v700_v11 = vmul.f32 (!%p926_p4), 0.01010101, %v695_v9  ;;  %v690_v19 = vld [vmem:[#allocation3] sm:$0xff] (!%p926_p4)  ;;  %v693_v29 = vld [vmem:[#allocation3 + $0x18] sm:$0xff] (!%p926_p4)  ;;  %v691_v31 = vld [vmem:[#allocation3 + $0x8] sm:$0xff] (!%p926_p4)  ;;  %s736_s0 = ssub.f32 (!%p926_p4), 1.0, %s645_s26  ;;  %v731_v46 = vstv (!%p926_p4), %s645_s26 }
 0x2ec   : > { %1088 = vrcp.f32 (!%p926_p4), %v701_v6 }
 0x2ed   : > { %664 = vadd.xlane.f32.xlu1 %v657_v58  ;;  %660 = vadd.xlane.f32.xlu0 %v655_v59  ;;  %1090 = vrcp.f32 %v699_v7  ;;  %v737_v48 = vstv %s736_s0 }
 0x2ee   : > { %1092 = vrcp.f32 %v702_v10 }
 0x2ef   : > { %1094 = vrcp.f32 %v700_v11 }
 0x2f1   : > { %676 = vadd.xlane.f32.xlu1 %v671_v62  ;;  %674 = vadd.xlane.f32.xlu0 %v670_v63 }
 0x2f5   : > { %680 = vadd.xlane.f32.xlu1 %v673_v2  ;;  %678 = vadd.xlane.f32.xlu0 %v672_v3 }
 0x2f6   : > { %v1089_v24 = vpop.eup %1088 }
 0x2f7   : > { %v1091_v26 = vpop.eup %1090  ;;  %v708_v21 = vmul.f32 %v1089_v24, %v692_v25 }
 0x2f8   : > { %v1093_v27 = vpop.eup %1092  ;;  %v704_v28 = vmul.f32 %v1091_v26, %v690_v19 }
 0x2f9   : > { %v1095_v30 = vpop.eup %1094  ;;  %v710_v33 = vmul.f32 %v1093_v27, %v693_v29 }
 0x2fa   : > { %v706_v35 = vmul.f32 %v1095_v30, %v691_v31 }
 0x376   : > { %v663_v12 = vpop.xlane.xlu1 %662  ;;  %v659_v14 = vpop.xlane.xlu0 %658 }
 0x377   : > { %v686_v13 = vmul.f32 1.442695, %v663_v12  ;;  %v682_v15 = vmul.f32 1.442695, %v659_v14 }
 0x379   : > { %1096 = vpow2.f32 %v686_v13 }
 0x37a   : > { %1098 = vpow2.f32 %v682_v15  ;;  %v665_v16 = vpop.xlane.xlu1 %664  ;;  %v1806_v18 = vpop.xlane.xlu0 %660 }
 0x37b   : > { %v688_v17 = vmul.f32 1.442695, %v665_v16  ;;  %v684_v23 = vmul.f32 1.442695, %v1806_v18 }
 0x37d   : > { %1100 = vpow2.f32 %v688_v17 }
 0x37e   : > { %1102 = vpow2.f32 %v684_v23  ;;  %v675_v40 = vpop.xlane.xlu0 %674  ;;  %v677_v41 = vpop.xlane.xlu1 %676 }
 0x382   : > { %v679_v43 = vpop.xlane.xlu0 %678  ;;  %v681_v54 = vpop.xlane.xlu1 %680 }
 0x383   : > { %v1097_v32 = vpop.eup %1096 }
 0x384   : > { %v1099_v20 = vpop.eup %1098  ;;  %v713_v22 = vadd.f32 %v1097_v32, %v708_v21 }
 0x385   : > { %v711_v34 = vadd.f32 %v1099_v20, %v704_v28 }
 0x386   : > { %1104 = vlog2.f32 %v713_v22 }
 0x387   : > { %v1101_v36 = vpop.eup %1100  ;;  %1106 = vlog2.f32 %v711_v34 }
 0x388   : > { %v1103_v37 = vpop.eup %1102  ;;  %v714_v38 = vadd.f32 %v1101_v36, %v710_v33 }
 0x389   : > { %v712_v39 = vadd.f32 %v1103_v37, %v706_v35 }
 0x38a   : > { %1108 = vlog2.f32 %v714_v38 }
 0x38b   : > { %1110 = vlog2.f32 %v712_v39 }
 0x390   : > { %v1105_v42 = vpop.eup %1104 }
 0x391   : > { %v1107_v44 = vpop.eup %1106  ;;  %v720_v45 = vmul.f32 0.6931472, %v1105_v42 }
 0x392   : > { %v716_v47 = vmul.f32 0.6931472, %v1107_v44 }
 0x393   : > { %v725_v49 = vsub.f32 %v663_v12, %v720_v45  ;;  %v729_v50 = vsub.f32 %v679_v43, %v720_v45 }
 0x394   : > { %v1109_v51 = vpop.eup %1108  ;;  %v723_v52 = vsub.f32 %v659_v14, %v716_v47  ;;  %v727_v53 = vsub.f32 %v675_v40, %v716_v47 }
 0x395   : > { %v1111_v55 = vpop.eup %1110  ;;  %v734_v56 = vmul.f32 %v731_v46, %v725_v49  ;;  %v722_v57 = vmul.f32 0.6931472, %v1109_v51  ;;  %v740_v58 = vmul.f32 %v737_v48, %v729_v50 }
 0x396   : > { %v732_v59 = vmul.f32 %v731_v46, %v723_v52  ;;  %v718_v60 = vmul.f32 0.6931472, %v1111_v55  ;;  %v738_v61 = vmul.f32 %v737_v48, %v727_v53 }
 0x397   : > { %v726_v62 = vsub.f32 %v665_v16, %v722_v57  ;;  %v744_v63 = vadd.f32 %v740_v58, %v734_v56  ;;  %v730_v0 = vsub.f32 %v681_v54, %v722_v57 }
 0x398   : > { %v724_v1 = vsub.f32 %v1806_v18, %v718_v60  ;;  %v742_v2 = vadd.f32 %v738_v61, %v732_v59  ;;  %v728_v3 = vsub.f32 %v677_v41, %v718_v60 }
 0x399   : > { %v735_v4 = vmul.f32 %v731_v46, %v726_v62  ;;  %v748_v5 = vsub.f32 0.0, %v744_v63  ;;  %v741_v6 = vmul.f32 %v737_v48, %v730_v0 }
 0x39a   : > { %v733_v7 = vmul.f32 %v731_v46, %v724_v1  ;;  %v746_v8 = vsub.f32 0.0, %v742_v2  ;;  %v739_v9 = vmul.f32 %v737_v48, %v728_v3 }
 0x39b   : > { %753 = vst.msk [vmem:[%s1709_s7 + $0x10] sm:$0xff] %vm750_vm14, %v748_v5  ;;  %v745_v10 = vadd.f32 %v741_v6, %v735_v4 }
 0x39c   : > { %751 = vst.msk [vmem:[%s1709_s7] sm:$0xff] %vm750_vm14, %v746_v8  ;;  %v743_v11 = vadd.f32 %v739_v9, %v733_v7 }
 0x39d   : > { %v749_v12 = vsub.f32 0.0, %v745_v10 }
 0x39e   : > { %v747_v13 = vsub.f32 0.0, %v743_v11 }
 0x39f   : > { %754 = vst.msk [vmem:[%s1709_s7 + $0x18] sm:$0xff] %vm750_vm14, %v749_v12 }
 0x3a0   : > { %752 = vst.msk [vmem:[%s1709_s7 + $0x8] sm:$0xff] %vm750_vm14, %v747_v13 }
 0x3a1 PF: > { %s25_s29 = sadd.s32 1, %s1334_s29   ;;  %s1903_s6 = sld [smem:[#allocation20_spill]] }
 0x3a2   : > { %p22_p9 = scmp.ge.s32.totalorder %s25_s29, 18   ;;  %s1904_s27 = sld [smem:[#allocation16_spill]] }
 0x3a3   : > { %s1905_s25 = sld [smem:[#allocation22_spill]]  ;;  %s1906_s26 = sld [smem:[#allocation17_spill]] }
 0x3a4   : > { %s1907_s0 = sld [smem:[#allocation18_spill]]  ;;  %s1908_s13 = sld [smem:[#allocation19_spill]] }
 0x3a5   : > { %s1909_s28 = sld [smem:[#allocation21_spill]]  ;;  %s1910_s20 = smov %s1298_s21 }
 0x3a6   : > { %s1911_s21 = smov %s1302_s22  ;;  %s1913_s23 = smov %s1310_s24 }
 0x3a7   : > { %s1912_s22 = smov %s1903_s6  ;;  %24 = sbr.rel (!%p22_p9) target bundleno = 15 (0xf), region = 133 }
 0x3a8   : > { %s1914_s24 = smov %s1904_s27 }
 0x3aa   : > { %s1915_s27 = smov %s1908_s13 }
 0x3ae   :  { %777 = vsyncpa [#allocation6], 1 }
 0x3af   :  { %779 = vsyncpa [#allocation6 + $0x1], 1 }
 0x3b0   :  { %780 = vsyncpa [#allocation8], 1 }
 0x3b1   :  { %782 = vsyncpa [#allocation8 + $0x1], 1 }
 0x3b2   :  { %783 = vsyncpa [#allocation11], 1 }
 0x3b3   :  { %785 = vsyncpa [#allocation11 + $0x1], 1 }

</bundles_post_ra>
